<compile_context>
chip_gen: v5e
topology: v5e:2x2
jax: 0.10.0
libtpu: 0.0.40
codegen_flags: <defaults>
</compile_context>

<pallas_src>
import functools

import jax
import jax.numpy as jnp
from jax.experimental import pallas as pl
from jax.experimental.pallas import tpu as pltpu


def _round_up(v: int, m: int) -> int:
    return ((v + m - 1) // m) * m


def mlp_softmax_kernel(x_ref, w1_ref, b1_ref, w2_ref, b2_ref, o_ref):
    # ----- hidden = sigmoid(x @ W1 + b1) -----
    x = x_ref[...]                                                      # f32 [TB, n_in]
    h = jnp.dot(x, w1_ref[...], preferred_element_type=jnp.float32)    # MXU, f32 acc
    h = h + b1_ref[...]
    # sigmoid via a single EUP tanh (half the transcendental work of exp + rcp)
    h = 0.5 * (jnp.tanh(0.5 * h) + 1.0)

    # ----- logits = hidden @ W2 + b2 -----
    logits = jnp.dot(h, w2_ref[...], preferred_element_type=jnp.float32) + b2_ref[...]

    # ----- softmax over the output-feature axis (exact divide: rows sum to 1) -----
    m = jnp.max(logits, axis=-1, keepdims=True)
    e = jnp.exp(logits - m)
    o_ref[...] = (e / jnp.sum(e, axis=-1, keepdims=True)).astype(o_ref.dtype)


@functools.partial(jax.jit, static_argnames=("block_b",))
def my_third_model_forward(x, w1, b1, w2, b2, *, block_b: int = 2048):
    """Forward pass of MyThirdModel.

    x  : [B, n_input]          float32
    w1 : [n_input, n_hidden]   float32   (PyTorch weight.T)
    b1 : [1, n_hidden]         float32
    w2 : [n_hidden, n_output]  float32   (PyTorch weight.T)
    b2 : [1, n_output]         float32
    returns [B, n_output] float32
    """
    B, n_input = x.shape
    n_hidden = w1.shape[1]
    n_output = w2.shape[1]

    # Pad the batch only up to a multiple of 8 (sublane alignment). No feature padding.
    b_pad = _round_up(B, 8)
    if b_pad != B:
        x = jnp.pad(x, ((0, b_pad - B), (0, 0)))

    # Batch tile: multiple of 8, at most the (padded) batch.
    tb = min(_round_up(block_b, 8), b_pad)
    grid = (pl.cdiv(b_pad, tb),)  # ragged last tile handled by Pallas (masked stores)

    out_p = pl.pallas_call(
        mlp_softmax_kernel,
        out_shape=jax.ShapeDtypeStruct((b_pad, n_output), jnp.float32),
        grid_spec=pltpu.PrefetchScalarGridSpec(
            num_scalar_prefetch=0,
            grid=grid,
            in_specs=[
                pl.BlockSpec((tb, n_input), lambda i: (i, 0)),       # x tile (pipelined)
                pl.BlockSpec((n_input, n_hidden), lambda i: (0, 0)),  # W1 (VMEM-resident)
                pl.BlockSpec((1, n_hidden), lambda i: (0, 0)),        # b1 (VMEM-resident)
                pl.BlockSpec((n_hidden, n_output), lambda i: (0, 0)),  # W2 (VMEM-resident)
                pl.BlockSpec((1, n_output), lambda i: (0, 0)),        # b2 (VMEM-resident)
            ],
            out_specs=pl.BlockSpec((tb, n_output), lambda i: (i, 0)),  # real-width output
        ),
        compiler_params=pltpu.CompilerParams(
            dimension_semantics=("parallel",),  # shard batch tiles across TCs (v7x)
        ),
    )(x, w1, b1, w2, b2)

    return out_p if b_pad == B else out_p[:B]


def init_linear_params(key, fan_in, fan_out):
    """Deterministic init mimicking nn.Linear: U(-1/sqrt(fan_in), 1/sqrt(fan_in))."""
    kw, kb = jax.random.split(key)
    bound = 1.0 / jnp.sqrt(jnp.float32(fan_in))
    # stored as [in, out] so the kernel computes x @ W
    w = jax.random.uniform(kw, (fan_in, fan_out), jnp.float32, -bound, bound)
    b = jax.random.uniform(kb, (1, fan_out), jnp.float32, -bound, bound)
    return w, b


def _reference(x, w1, b1, w2, b2):
    h = jax.nn.sigmoid(x @ w1 + b1)
    return jax.nn.softmax(h @ w2 + b2, axis=1)


if __name__ == "__main__":
    # Small shapes consistent with MyThirdModel(n_input, n_hidden_unit, n_output)
    n_input, n_hidden, n_output = 32, 64, 16

    key = jax.random.PRNGKey(0)
    kx, k1, k2, kx2 = jax.random.split(key, 4)

    w1, b1 = init_linear_params(k1, n_input, n_hidden)
    w2, b2 = init_linear_params(k2, n_hidden, n_output)

    # --- run 1: batch already sublane-aligned ---
    batch = 8
    x = jax.random.normal(kx, (batch, n_input), jnp.float32)
    out = jax.block_until_ready(my_third_model_forward(x, w1, b1, w2, b2))
    ref = _reference(x, w1, b1, w2, b2)
    assert out.shape == (batch, n_output)
    assert jnp.allclose(out, ref, atol=2e-3, rtol=0), float(jnp.max(jnp.abs(out - ref)))
    assert jnp.allclose(jnp.sum(out, axis=1), 1.0, atol=1e-3)

    # --- run 2: ragged batch (exercises the batch-padding / row-slice path) ---
    batch2 = 10
    x2 = jax.random.normal(kx2, (batch2, n_input), jnp.float32)
    out2 = jax.block_until_ready(my_third_model_forward(x2, w1, b1, w2, b2))
    ref2 = _reference(x2, w1, b1, w2, b2)
    assert out2.shape == (batch2, n_output)
    assert jnp.allclose(out2, ref2, atol=2e-3, rtol=0), float(jnp.max(jnp.abs(out2 - ref2)))
    assert jnp.allclose(jnp.sum(out2, axis=1), 1.0, atol=1e-3)

    print("KERNEL_OK")
</pallas_src>

<mosaic_0001>
module attributes {stable_mosaic.version = 11 : i64} {
  func.func @mlp_softmax_kernel(%arg0: i32, %arg1: memref<8x32xf32, #tpu.memory_space<vmem>>, %arg2: memref<32x64xf32, #tpu.memory_space<vmem>>, %arg3: memref<1x64xf32, #tpu.memory_space<vmem>>, %arg4: memref<64x16xf32, #tpu.memory_space<vmem>>, %arg5: memref<1x16xf32, #tpu.memory_space<vmem>>, %arg6: memref<8x16xf32, #tpu.memory_space<vmem>>) attributes {dimension_semantics = [#tpu.dimension_semantics<parallel>], iteration_bounds = array<i64: 1>, scalar_prefetch = 0 : i64, scratch_operands = 0 : i64, tpu.core_type = #tpu.core_type<tc>, window_params = [{transform_indices = @transform_0, window_bounds = array<i64: 8, 32>}, {pipeline_mode = #tpu.pipeline_mode<synchronous>, transform_indices = @transform_1, window_bounds = array<i64: 32, 64>}, {pipeline_mode = #tpu.pipeline_mode<synchronous>, transform_indices = @transform_2, window_bounds = array<i64: 1, 64>}, {pipeline_mode = #tpu.pipeline_mode<synchronous>, transform_indices = @transform_3, window_bounds = array<i64: 64, 16>}, {pipeline_mode = #tpu.pipeline_mode<synchronous>, transform_indices = @transform_4, window_bounds = array<i64: 1, 16>}, {transform_indices = @transform_5, window_bounds = array<i64: 8, 16>}]} {
    %c0 = arith.constant 0 : index
    %c0_0 = arith.constant 0 : index
    %0 = vector.load %arg1[%c0, %c0_0] : memref<8x32xf32, #tpu.memory_space<vmem>>, vector<8x32xf32>
    %c0_1 = arith.constant 0 : index
    %c0_2 = arith.constant 0 : index
    %1 = vector.load %arg2[%c0_1, %c0_2] : memref<32x64xf32, #tpu.memory_space<vmem>>, vector<32x64xf32>
    %cst = arith.constant dense<0.000000e+00> : vector<8x64xf32>
    %2 = tpu.matmul %0, %1, %cst {dimension_numbers = #tpu.dot_dimension_numbers<[1], [0], [0], [1], [0, 0, 1, 1], [], []>} : vector<8x32xf32>, vector<32x64xf32>, vector<8x64xf32> -> vector<8x64xf32>
    %c0_3 = arith.constant 0 : index
    %c0_4 = arith.constant 0 : index
    %3 = vector.load %arg3[%c0_3, %c0_4] : memref<1x64xf32, #tpu.memory_space<vmem>>, vector<1x64xf32>
    %4 = vector.broadcast %3 : vector<1x64xf32> to vector<8x64xf32>
    %5 = arith.addf %2, %4 : vector<8x64xf32>
    %cst_5 = arith.constant 5.000000e-01 : f32
    %6 = vector.broadcast %cst_5 : f32 to vector<8x64xf32>
    %7 = arith.mulf %6, %5 : vector<8x64xf32>
    %8 = math.tanh %7 : vector<8x64xf32>
    %cst_6 = arith.constant 1.000000e+00 : f32
    %9 = vector.broadcast %cst_6 : f32 to vector<8x64xf32>
    %10 = arith.addf %8, %9 : vector<8x64xf32>
    %cst_7 = arith.constant 5.000000e-01 : f32
    %11 = vector.broadcast %cst_7 : f32 to vector<8x64xf32>
    %12 = arith.mulf %11, %10 : vector<8x64xf32>
    %c0_8 = arith.constant 0 : index
    %c0_9 = arith.constant 0 : index
    %13 = vector.load %arg4[%c0_8, %c0_9] : memref<64x16xf32, #tpu.memory_space<vmem>>, vector<64x16xf32>
    %cst_10 = arith.constant dense<0.000000e+00> : vector<8x16xf32>
    %14 = tpu.matmul %12, %13, %cst_10 {dimension_numbers = #tpu.dot_dimension_numbers<[1], [0], [0], [1], [0, 0, 1, 1], [], []>} : vector<8x64xf32>, vector<64x16xf32>, vector<8x16xf32> -> vector<8x16xf32>
    %c0_11 = arith.constant 0 : index
    %c0_12 = arith.constant 0 : index
    %15 = vector.load %arg5[%c0_11, %c0_12] : memref<1x16xf32, #tpu.memory_space<vmem>>, vector<1x16xf32>
    %16 = vector.broadcast %15 : vector<1x16xf32> to vector<8x16xf32>
    %17 = arith.addf %14, %16 : vector<8x16xf32>
    %cst_13 = arith.constant dense<0xFF800000> : vector<8xf32>
    %18 = vector.multi_reduction <maximumf>, %17, %cst_13 [1] : vector<8x16xf32> to vector<8xf32>
    %19 = vector.shape_cast %18 : vector<8xf32> to vector<8x1xf32>
    %20 = vector.broadcast %19 : vector<8x1xf32> to vector<8x16xf32>
    %21 = arith.subf %17, %20 : vector<8x16xf32>
    %22 = math.exp %21 : vector<8x16xf32>
    %cst_14 = arith.constant dense<0.000000e+00> : vector<8xf32>
    %23 = vector.multi_reduction <add>, %22, %cst_14 [1] : vector<8x16xf32> to vector<8xf32>
    %24 = vector.shape_cast %23 : vector<8xf32> to vector<8x1xf32>
    %25 = vector.broadcast %24 : vector<8x1xf32> to vector<8x16xf32>
    %26 = arith.divf %22, %25 : vector<8x16xf32>
    %c0_15 = arith.constant 0 : index
    %c0_16 = arith.constant 0 : index
    %27 = vector.load %arg6[%c0_15, %c0_16] : memref<8x16xf32, #tpu.memory_space<vmem>>, vector<8x16xf32>
    tpu.vector_store %arg6[%c0_15, %c0_16], %26 {strides = array<i32>} : memref<8x16xf32, #tpu.memory_space<vmem>>, vector<8x16xf32>,
    return
  }
  func.func @transform_0(%arg0: i32) -> (i32, i32) {
    %c0_i32 = arith.constant 0 : i32
    %c0_i32_0 = arith.constant 0 : i32
    return %arg0, %c0_i32 : i32, i32
  }
  func.func @transform_1(%arg0: i32) -> (i32, i32) {
    %c0_i32 = arith.constant 0 : i32
    %c0_i32_0 = arith.constant 0 : i32
    %c0_i32_1 = arith.constant 0 : i32
    return %c0_i32, %c0_i32_0 : i32, i32
  }
  func.func @transform_2(%arg0: i32) -> (i32, i32) {
    %c0_i32 = arith.constant 0 : i32
    %c0_i32_0 = arith.constant 0 : i32
    %c0_i32_1 = arith.constant 0 : i32
    return %c0_i32, %c0_i32_0 : i32, i32
  }
  func.func @transform_3(%arg0: i32) -> (i32, i32) {
    %c0_i32 = arith.constant 0 : i32
    %c0_i32_0 = arith.constant 0 : i32
    %c0_i32_1 = arith.constant 0 : i32
    return %c0_i32, %c0_i32_0 : i32, i32
  }
  func.func @transform_4(%arg0: i32) -> (i32, i32) {
    %c0_i32 = arith.constant 0 : i32
    %c0_i32_0 = arith.constant 0 : i32
    %c0_i32_1 = arith.constant 0 : i32
    return %c0_i32, %c0_i32_0 : i32, i32
  }
  func.func @transform_5(%arg0: i32) -> (i32, i32) {
    %c0_i32 = arith.constant 0 : i32
    %c0_i32_0 = arith.constant 0 : i32
    return %arg0, %c0_i32 : i32, i32
  }
}

</mosaic_0001>

<bundles_post_ra>
// kernel: my_third_model_forward.1
= control target key start
LH: loop header
LB: loop body
LE: loop exit
PB: predicated region body
PF: predicated region fallthrough
CT: control target
= control target key end

     0   :  { %s255_s0 = inlined_call_operand.vmem [shape: f32[8,32], index: 0, kind: input, shape index: {}]   ;;  %s256_s1 = inlined_call_operand.vmem [shape: f32[32,64], index: 1, kind: input, shape index: {}]   ;;  %s257_s2 = inlined_call_operand.vmem [shape: f32[1,64], index: 2, kind: input, shape index: {}]   ;;  %s258_s3 = inlined_call_operand.vmem [shape: f32[64,16], index: 3, kind: input, shape index: {}]   ;;  %s259_s4 = inlined_call_operand.vmem [shape: f32[1,16], index: 4, kind: input, shape index: {}]   ;;  %s260_s5 = inlined_call_operand.hbm [shape: f32[8,16], index: 5, kind: output, shape index: {}]  }
   0x1   :  { %v25_v0 = vld [vmem:[%s256_s1 + $0x18] sm:$0xff]  ;;  %v24_v1 = vld [vmem:[%s256_s1 + $0x10] sm:$0xff]  ;;  %v23_v2 = vld [vmem:[%s256_s1 + $0x8] sm:$0xff] }
   0x2   :  { %46 = vmatpush.msra.mxu0 %v25_v0 }
   0x3   :  { %10 = vsyncpa [#allocation3], 0  ;;  %v22_v3 = vld [vmem:[%s256_s1] sm:$0xff]  ;;  %vm30_vm0 = vcmask 261120   ;;  %v65_v5 = vld [vmem:[%s258_s3 + $0x38] sm:$0xff]  ;;  %vm70_vm1 = vcmask 523264  }
   0x4   :  { %47 = vmatpush.msra.mxu0 %v24_v1  ;;  %v21_v4 = vld [vmem:[%s255_s0] sm:$0xff]  ;;  %82 = vmatpush.msra.mxu1 %v65_v5  ;;  %v64_v6 = vld [vmem:[%s258_s3 + $0x30] sm:$0xff]  ;;  %v63_v7 = vld [vmem:[%s258_s3 + $0x28] sm:$0xff]  ;;  %vm94_vm2 = vcmask 130048   ;;  %s127_s22 = sshll.u32 %s260_s5, 4  ;;  %s128_s22 = int_to_ptr.hbm [resolvable:$true] %s127_s22 }
   0x5   :  { %v62_v8 = vld [vmem:[%s258_s3 + $0x20] sm:$0xff]  ;;  %v61_v9 = vld [vmem:[%s258_s3 + $0x18] sm:$0xff]  ;;  %v60_v10 = vld [vmem:[%s258_s3 + $0x10] sm:$0xff] }
   0x6   :  { %48 = vmatpush.msra.mxu0 %v23_v2  ;;  %83 = vmatpush.msra.mxu1 %v64_v6  ;;  %v59_v11 = vld [vmem:[%s258_s3 + $0x8] sm:$0xff]  ;;  %v58_v12 = vld [vmem:[%s258_s3] sm:$0xff] }
   0x7   :  { %v139_v13 = vld [vmem:[%s257_s2] ss:$0 sm:$0xff]  ;;  %s173_s2 = smov [#allocation2]  }
   0x8   :  { %49 = vmatpush.msra.mxu0 %v22_v3  ;;  %84 = vmatpush.msra.mxu1 %v63_v7  ;;  %v140_v20 = vld [vmem:[%s259_s4] ss:$0 sm:$0xff]  ;;  %s125_s3 = sshll.u32 %s173_s2, 4  ;;  %s126_s3 = int_to_ptr.vmem [resolvable:$true] %s125_s3 }
   0x9   :  { %136 = vmatmul.msk.f32.vlgmr.msra.gmra.mxu0 %vm30_vm0, %v21_v4 }
   0xa   :  { %85 = vmatpush.msra.mxu1 %v62_v8 }
   0xc   :  { %86 = vmatpush.msra.mxu1 %v61_v9 }
   0xe   :  { %87 = vmatpush.msra.mxu1 %v60_v10 }
  0x10   :  { %88 = vmatpush.msra.mxu1 %v59_v11 }
  0x12   :  { %89 = vmatpush.msra.mxu1 %v58_v12 }
  0x86   :  { %v51_v14 = vpop.f32.mrf.mxu0 }
  0x87   :  { %v52_v15 = vadd.f32 %v139_v13, %v51_v14 }
  0x89   :  { %v54_v16 = vmul.f32 0.5, %v52_v15 }
  0x8b   :  { %141 = vtanh.f32 %v54_v16 }
  0x91   :  { %v142_v17 = vpop.eup %141 }
  0x92   :  { %v56_v18 = vadd.f32 1.0, %v142_v17 }
  0x94   :  { %v57_v19 = vmul.f32 0.5, %v56_v18 }
  0x96   :  { %137 = vmatmul.msk.f32.vlgmr.msra.gmra.mxu1 %vm70_vm1, %v57_v19 }
 0x113   :  { %v91_v21 = vpop.f32.mrf.mxu1 }
 0x114   :  { %v92_v22 = vadd.f32 %v140_v20, %v91_v21 }
 0x116   :  { %v95_v23 = vsel %vm94_vm2, %v92_v22, -inf }
 0x117   :  { %96 = vmax.xlane.f32.xlu0 %v95_v23 }
 0x18a   :  { %v97_v24 = vpop.xlane.xlu0 %96 }
 0x18b   :  { %v98_v25 = vsub.f32 %v92_v22, %v97_v24 }
 0x18d   :  { %v99_v26 = vmul.f32 1.442695, %v98_v25 }
 0x18f   :  { %143 = vpow2.f32 %v99_v26 }
 0x195   :  { %v144_v27 = vpop.eup %143 }
 0x196   :  { %v101_v28 = vsel %vm94_vm2, %v144_v27, 0.0 }
 0x197   :  { %102 = vadd.xlane.f32.xlu0 %v101_v28 }
 0x20a   :  { %v103_v29 = vpop.xlane.xlu0 %102 }
 0x20b   :  { %145 = vrcp.f32 %v103_v29  ;;  %v115_v33 = vand.u32 2147483648, %v103_v29  ;;  %v113_v35 = vand.u32 2147483647, %v103_v29  ;;  %vm109_vm4 = vweird.f32 %v103_v29 }
 0x20d   :  { %v116_v37 = vor.u32 1.1754944e-38, %v115_v33  ;;  %vm114_vm6 = vcmp.eq.f32.partialorder %v113_v35, 8.507059e+37 }
 0x211   :  { %v146_v30 = vpop.eup %145 }
 0x212   :  { %v105_v31 = vmul.f32 %v146_v30, %v103_v29  ;;  %vm110_vm3 = vweird.f32 %v146_v30 }
 0x213   :  { %vm111_vm5 = vmor %vm109_vm4, %vm110_vm3 }
 0x214   :  { %v106_v32 = vsub.f32 1.0, %v105_v31 }
 0x216   :  { %v107_v34 = vmul.f32 %v146_v30, %v106_v32 }
 0x218   :  { %v108_v36 = vadd.f32 %v146_v30, %v107_v34 }
 0x21a   :  { %v112_v38 = vsel %vm111_vm5, %v146_v30, %v108_v36 }
 0x21b   :  { %v117_v39 = vsel %vm114_vm6, %v116_v37, %v112_v38 }
 0x21c   :  { %v118_v40 = vmul.f32 %v144_v27, %v117_v39 }
 0x21e   :  { %119 = vst.msk [vmem:[#allocation2] sm:$0xff] %vm94_vm2, %v118_v40 }
 0x21f   :  { %130 = dma.vmem_to_hbm [thread:$0]  %s126_s3, 128, %s128_s22, [#allocation3]  }
 0x220   :  { %171 = dma.done.wait [#allocation3], 128  }
 0x221   :  { %172 = vsyncadd [#allocation3], 4294967168 }
 0x222   :  { %135 = vsyncpa [#allocation3], 1 }

</bundles_post_ra>
